<compile_context>
chip_gen: v5e
topology: v5e:2x2
jax: 0.10.0
libtpu: 0.0.40
codegen_flags: <defaults>
</compile_context>

<pallas_src>
import jax
import jax.numpy as jnp
from jax.experimental import pallas as pl
from jax.experimental.pallas import tpu as pltpu

NUM_COMPONENTS = 4
S = 12
LOW = 0.0     # truncation bounds (stored by TruncatedNormal; no tensor math here)
HIGH = 200.0


def _softplus(x):
    # numerically stable softplus, matches torch.nn.functional.softplus default
    return jnp.maximum(x, 0.0) + jnp.log1p(jnp.exp(-jnp.abs(x)))


def mixture_kernel(m_ref, s_ref, p_ref, probs_ref, ms_ref):
    # m_ref : (1, K) softplusinv_means
    # s_ref : (1, K) softplusinv_scales
    # p_ref : (S, K) mixture logits
    # probs_ref: (S, K) softmax output
    # ms_ref   : (2, K) row 0 = means, row 1 = scales (post-softplus)

    # per-component parameters (tiny; broadcast to (S, K) happens in wrapper)
    ms_ref[0:1, :] = _softplus(m_ref[...])            # means
    ms_ref[1:2, :] = _softplus(s_ref[...]) + 0.2      # scales

    # softmax over the component axis (torch dim=1)
    logits = p_ref[...]
    z = logits - jnp.max(logits, axis=1, keepdims=True)
    e = jnp.exp(z)
    denom = jnp.sum(e, axis=1, keepdims=True)
    probs_ref[...] = e * pl.reciprocal(denom, approx=False)


def mixture_forward(softplusinv_means, softplusinv_scales, mixture_probs):
    K = softplusinv_means.shape[0]
    S_ = mixture_probs.shape[0]
    # reshape (K,) -> (1, K) is metadata-only; no extra XLA kernel / HBM trip
    m = softplusinv_means.reshape(1, K).astype(jnp.float32)
    s = softplusinv_scales.reshape(1, K).astype(jnp.float32)
    p = mixture_probs.astype(jnp.float32)

    probs, ms = pl.pallas_call(
        mixture_kernel,
        out_shape=(
            jax.ShapeDtypeStruct((S_, K), jnp.float32),   # softmax probs
            jax.ShapeDtypeStruct((2, K), jnp.float32),    # [means; scales]
        ),
        in_specs=[
            pl.BlockSpec(memory_space=pltpu.MemorySpace.VMEM),
            pl.BlockSpec(memory_space=pltpu.MemorySpace.VMEM),
            pl.BlockSpec(memory_space=pltpu.MemorySpace.VMEM),
        ],
        out_specs=(
            pl.BlockSpec(memory_space=pltpu.MemorySpace.VMEM),
            pl.BlockSpec(memory_space=pltpu.MemorySpace.VMEM),
        ),
        cost_estimate=pl.CostEstimate(
            flops=300, transcendentals=60, bytes_accessed=800),
    )(m, s, p)

    # lazy/cheap broadcasts outside the kernel (torch's .expand equivalent)
    expanded_means = jnp.broadcast_to(ms[0][None, :], (S_, K))
    expanded_scales = jnp.broadcast_to(ms[1][None, :], (S_, K))
    return probs, expanded_means, expanded_scales


def reference_forward(softplusinv_means, softplusinv_scales, mixture_probs):
    means = jax.nn.softplus(softplusinv_means)
    scales = jax.nn.softplus(softplusinv_scales) + 0.2
    probs = jax.nn.softmax(mixture_probs, axis=1)
    S_, K = mixture_probs.shape
    return (probs,
            jnp.broadcast_to(means[None, :], (S_, K)),
            jnp.broadcast_to(scales[None, :], (S_, K)))


if __name__ == "__main__":
    key = jax.random.PRNGKey(0)
    k1, k2, k3 = jax.random.split(key, 3)
    # Same init semantics as the torch module: rand() ~ U[0,1)
    softplusinv_means = jax.random.uniform(k1, (NUM_COMPONENTS,), jnp.float32) * 50.0
    softplusinv_scales = jax.random.uniform(k2, (NUM_COMPONENTS,), jnp.float32)
    mixture_probs = jax.random.uniform(k3, (S, NUM_COMPONENTS), jnp.float32)

    probs, exp_means, exp_scales = mixture_forward(
        softplusinv_means, softplusinv_scales, mixture_probs)
    jax.block_until_ready((probs, exp_means, exp_scales))

    r_probs, r_means, r_scales = reference_forward(
        softplusinv_means, softplusinv_scales, mixture_probs)

    assert probs.shape == (S, NUM_COMPONENTS)
    assert exp_means.shape == (S, NUM_COMPONENTS)
    assert exp_scales.shape == (S, NUM_COMPONENTS)
    assert jnp.allclose(probs, r_probs, atol=1e-5, rtol=1e-5)
    assert jnp.allclose(exp_means, r_means, atol=1e-5, rtol=1e-5)
    assert jnp.allclose(exp_scales, r_scales, atol=1e-5, rtol=1e-5)

    print("KERNEL_OK")
</pallas_src>

<mosaic_0001>
module attributes {stable_mosaic.version = 11 : i64} {
  func.func @mixture_kernel(%arg0: memref<1x4xf32, #tpu.memory_space<vmem>>, %arg1: memref<1x4xf32, #tpu.memory_space<vmem>>, %arg2: memref<12x4xf32, #tpu.memory_space<vmem>>, %arg3: memref<12x4xf32, #tpu.memory_space<vmem>>, %arg4: memref<2x4xf32, #tpu.memory_space<vmem>>) attributes {dimension_semantics = [], scalar_prefetch = 0 : i64, scratch_operands = 0 : i64, tpu.core_type = #tpu.core_type<tc>} {
    %c0 = arith.constant 0 : index
    %c0_0 = arith.constant 0 : index
    %0 = vector.load %arg0[%c0, %c0_0] : memref<1x4xf32, #tpu.memory_space<vmem>>, vector<1x4xf32>
    %cst = arith.constant 0.000000e+00 : f32
    %1 = vector.broadcast %cst : f32 to vector<1x4xf32>
    %2 = arith.maximumf %0, %1 : vector<1x4xf32>
    %3 = math.absf %0 : vector<1x4xf32>
    %cst_1 = arith.constant 0.000000e+00 : f32
    %4 = vector.broadcast %cst_1 : f32 to vector<1x4xf32>
    %5 = arith.subf %4, %3 : vector<1x4xf32>
    %6 = math.exp %5 : vector<1x4xf32>
    %7 = math.log1p %6 : vector<1x4xf32>
    %8 = arith.addf %2, %7 : vector<1x4xf32>
    %c0_2 = arith.constant 0 : index
    %c0_3 = arith.constant 0 : index
    %9 = vector.load %arg4[%c0_2, %c0_3] : memref<2x4xf32, #tpu.memory_space<vmem>>, vector<1x4xf32>
    tpu.vector_store %arg4[%c0_2, %c0_3], %8 {strides = array<i32>} : memref<2x4xf32, #tpu.memory_space<vmem>>, vector<1x4xf32>,
    %c0_4 = arith.constant 0 : index
    %c0_5 = arith.constant 0 : index
    %10 = vector.load %arg1[%c0_4, %c0_5] : memref<1x4xf32, #tpu.memory_space<vmem>>, vector<1x4xf32>
    %cst_6 = arith.constant 0.000000e+00 : f32
    %11 = vector.broadcast %cst_6 : f32 to vector<1x4xf32>
    %12 = arith.maximumf %10, %11 : vector<1x4xf32>
    %13 = math.absf %10 : vector<1x4xf32>
    %cst_7 = arith.constant 0.000000e+00 : f32
    %14 = vector.broadcast %cst_7 : f32 to vector<1x4xf32>
    %15 = arith.subf %14, %13 : vector<1x4xf32>
    %16 = math.exp %15 : vector<1x4xf32>
    %17 = math.log1p %16 : vector<1x4xf32>
    %18 = arith.addf %12, %17 : vector<1x4xf32>
    %cst_8 = arith.constant 2.000000e-01 : f32
    %19 = vector.broadcast %cst_8 : f32 to vector<1x4xf32>
    %20 = arith.addf %18, %19 : vector<1x4xf32>
    %c1 = arith.constant 1 : index
    %c0_9 = arith.constant 0 : index
    %21 = vector.load %arg4[%c1, %c0_9] : memref<2x4xf32, #tpu.memory_space<vmem>>, vector<1x4xf32>
    tpu.vector_store %arg4[%c1, %c0_9], %20 {strides = array<i32>} : memref<2x4xf32, #tpu.memory_space<vmem>>, vector<1x4xf32>,
    %c0_10 = arith.constant 0 : index
    %c0_11 = arith.constant 0 : index
    %22 = vector.load %arg2[%c0_10, %c0_11] : memref<12x4xf32, #tpu.memory_space<vmem>>, vector<12x4xf32>
    %cst_12 = arith.constant dense<0xFF800000> : vector<12xf32>
    %23 = vector.multi_reduction <maximumf>, %22, %cst_12 [1] : vector<12x4xf32> to vector<12xf32>
    %24 = vector.shape_cast %23 : vector<12xf32> to vector<12x1xf32>
    %25 = vector.broadcast %24 : vector<12x1xf32> to vector<12x4xf32>
    %26 = arith.subf %22, %25 : vector<12x4xf32>
    %27 = math.exp %26 : vector<12x4xf32>
    %cst_13 = arith.constant dense<0.000000e+00> : vector<12xf32>
    %28 = vector.multi_reduction <add>, %27, %cst_13 [1] : vector<12x4xf32> to vector<12xf32>
    %29 = vector.shape_cast %28 : vector<12xf32> to vector<12x1xf32>
    %30 = tpu.reciprocal %29 : vector<12x1xf32> -> vector<12x1xf32>
    %31 = vector.broadcast %30 : vector<12x1xf32> to vector<12x4xf32>
    %32 = arith.mulf %27, %31 : vector<12x4xf32>
    %c0_14 = arith.constant 0 : index
    %c0_15 = arith.constant 0 : index
    %33 = vector.load %arg3[%c0_14, %c0_15] : memref<12x4xf32, #tpu.memory_space<vmem>>, vector<12x4xf32>
    tpu.vector_store %arg3[%c0_14, %c0_15], %32 {strides = array<i32>} : memref<12x4xf32, #tpu.memory_space<vmem>>, vector<12x4xf32>,
    return
  }
}

</mosaic_0001>

<bundles_post_ra>
// kernel: tpu_custom_call.1
= control target key start
LH: loop header
LB: loop body
LE: loop exit
PB: predicated region body
PF: predicated region fallthrough
CT: control target
= control target key end

     0   :  { %vm55_vm0 = vcmask 31744   ;;  %s231_s0 = inlined_call_operand.vmem [shape: f32[1,4], index: 0, kind: input, shape index: {}]   ;;  %s232_s1 = inlined_call_operand.vmem [shape: f32[1,4], index: 1, kind: input, shape index: {}]   ;;  %s233_s2 = inlined_call_operand.vmem [shape: f32[12,4], index: 2, kind: input, shape index: {}]   ;;  %s234_s3 = inlined_call_operand.vmem [shape: f32[12,4], index: 3, kind: output, shape index: {0}]   ;;  %s235_s4 = inlined_call_operand.hbm [shape: f32[2,4], index: 4, kind: output, shape index: {1}]  }
   0x1   :  { %v53_v0 = vld [vmem:[%s233_s2] sm:$0xff] }
   0x2   :  { %v56_v1 = vsel %vm55_vm0, %v53_v0, -inf }
   0x3   :  { %10 = vsyncpa [#allocation3], 0  ;;  %57 = vmax.xlane.f32.xlu0 %v56_v1  ;;  %v54_v2 = vld [vmem:[%s233_s2 + $0x8] sm:$0xf]  ;;  %vm59_vm1 = vcmask 27648   ;;  %s116_s24 = sshll.u32 %s235_s4, 4  ;;  %s117_s24 = int_to_ptr.hbm [resolvable:$true] %s116_s24 }
   0x4   :  { %v60_v3 = vsel %vm59_vm1, %v54_v2, -inf  ;;  %v35_v14 = vld [vmem:[%s232_s1] sm:$0x1]  ;;  %vm33_vm4 = vcmask 24576  }
   0x5   :  { %v37_v15 = vand.u32 2147483647, %v35_v14  ;;  %v17_v16 = vld [vmem:[%s231_s0] sm:$0x1]  ;;  %v36_v36 = vmax.f32 %v35_v14, 0.0  ;;  %s170_s0 = smov [#allocation2]  }
   0x6   :  { %v19_v17 = vand.u32 2147483647, %v17_v16  ;;  %v18_v40 = vmax.f32 %v17_v16, 0.0  ;;  %s114_s1 = sshll.u32 %s170_s0, 4  ;;  %s115_s1 = int_to_ptr.vmem [resolvable:$true] %s114_s1 }
   0x7   :  { %v38_v18 = vsub.f32 0.0, %v37_v15 }
   0x8   :  { %v20_v19 = vsub.f32 0.0, %v19_v17 }
   0x9   :  { %v39_v20 = vmul.f32 1.442695, %v38_v18 }
   0xa   :  { %v21_v21 = vmul.f32 1.442695, %v20_v19 }
   0xb   :  { %61 = vmax.xlane.f32.xlu0 %v60_v3 }
  0x76   :  { %v58_v4 = vpop.xlane.xlu0 %57 }
  0x77   :  { %v63_v5 = vsub.f32 %v53_v0, %v58_v4 }
  0x79   :  { %v65_v6 = vmul.f32 1.442695, %v63_v5 }
  0x7b   :  { %128 = vpow2.f32 %v65_v6 }
  0x7e   :  { %v62_v7 = vpop.xlane.xlu0 %61 }
  0x7f   :  { %v64_v8 = vsub.f32 %v54_v2, %v62_v7 }
  0x81   :  { %v204_v9 = vpop.eup %128  ;;  %v67_v10 = vmul.f32 1.442695, %v64_v8 }
  0x82   :  { %v69_v11 = vsel %vm55_vm0, %v204_v9, 0.0 }
  0x83   :  { %130 = vpow2.f32 %v67_v10  ;;  %70 = vadd.xlane.f32.xlu1 %v69_v11 }
  0x84   :  { %132 = vpow2.f32 %v39_v20 }
  0x85   :  { %134 = vpow2.f32 %v21_v21 }
  0x89   :  { %v208_v12 = vpop.eup %130 }
  0x8a   :  { %v72_v13 = vsel %vm59_vm1, %v208_v12, 0.0  ;;  %v133_v22 = vpop.eup %132 }
  0x8b   :  { %73 = vadd.xlane.f32.xlu1 %v72_v13  ;;  %v41_v23 = vadd.f32 1.0, %v133_v22  ;;  %v135_v24 = vpop.eup %134  ;;  %v44_v26 = vmul.f32 -0.5, %v133_v22  ;;  %v47_v30 = vand.u32 2147483647, %v133_v22 }
  0x8c   :  { %v23_v25 = vadd.f32 1.0, %v135_v24  ;;  %v26_v27 = vmul.f32 -0.5, %v135_v24  ;;  %v29_v35 = vand.u32 2147483647, %v135_v24 }
  0x8d   :  { %136 = vlog2.f32 %v41_v23  ;;  %v45_v28 = vadd.f32 1.0, %v44_v26  ;;  %vm48_vm2 = vcmp.lt.f32.partialorder %v47_v30, 0.0004427343 }
  0x8e   :  { %138 = vlog2.f32 %v23_v25  ;;  %v27_v31 = vadd.f32 1.0, %v26_v27  ;;  %vm30_vm3 = vcmp.lt.f32.partialorder %v29_v35, 0.0004427343 }
  0x8f   :  { %v46_v33 = vmul.f32 %v133_v22, %v45_v28 }
  0x90   :  { %v28_v38 = vmul.f32 %v135_v24, %v27_v31 }
  0x93   :  { %v137_v29 = vpop.eup %136 }
  0x94   :  { %v43_v32 = vmul.f32 0.6931472, %v137_v29  ;;  %v139_v34 = vpop.eup %138 }
  0x95   :  { %v25_v37 = vmul.f32 0.6931472, %v139_v34 }
  0x96   :  { %v49_v39 = vsel %vm48_vm2, %v46_v33, %v43_v32 }
  0x97   :  { %v50_v41 = vadd.f32 %v49_v39, %v36_v36  ;;  %v31_v42 = vsel %vm30_vm3, %v28_v38, %v25_v37 }
  0x98   :  { %v32_v43 = vadd.f32 %v31_v42, %v18_v40 }
  0x99   :  { %v51_v44 = vadd.f32 0.2, %v50_v41 }
  0x9a   :  { %34 = vst.msk [vmem:[#allocation2] sm:$0x1] %vm33_vm4, %v32_v43 }
  0x9b   :  { %52 = vst.msk [vmem:[#allocation2 + $0x1] sm:$0x1] %vm33_vm4, %v51_v44 }
  0x9c   :  { %119 = dma.vmem_to_hbm [thread:$0]  %s115_s1, 32, %s117_s24, [#allocation3]  }
  0xf6   :  { %v71_v45 = vpop.xlane.xlu1 %70 }
  0xf7   :  { %140 = vrcp.f32 %v71_v45  ;;  %v86_v50 = vand.u32 2147483648, %v71_v45  ;;  %v84_v52 = vand.u32 2147483647, %v71_v45  ;;  %vm80_vm6 = vweird.f32 %v71_v45 }
  0xf9   :  { %v87_v55 = vor.u32 1.1754944e-38, %v86_v50  ;;  %vm85_vm8 = vcmp.eq.f32.partialorder %v84_v52, 8.507059e+37 }
  0xfd   :  { %v141_v46 = vpop.eup %140 }
  0xfe   :  { %v76_v47 = vmul.f32 %v141_v46, %v71_v45  ;;  %v74_v48 = vpop.xlane.xlu1 %73  ;;  %vm81_vm5 = vweird.f32 %v141_v46 }
  0xff   :  { %142 = vrcp.f32 %v74_v48  ;;  %vm82_vm7 = vmor %vm80_vm6, %vm81_vm5  ;;  %v100_v61 = vand.u32 2147483648, %v74_v48  ;;  %v98_v63 = vand.u32 2147483647, %v74_v48  ;;  %vm94_vm10 = vweird.f32 %v74_v48 }
 0x100   :  { %v77_v49 = vsub.f32 1.0, %v76_v47 }
 0x101   :  { %v101_v1 = vor.u32 1.1754944e-38, %v100_v61  ;;  %vm99_vm12 = vcmp.eq.f32.partialorder %v98_v63, 8.507059e+37 }
 0x102   :  { %v78_v51 = vmul.f32 %v141_v46, %v77_v49 }
 0x104   :  { %v79_v53 = vadd.f32 %v141_v46, %v78_v51 }
 0x105   :  { %v143_v54 = vpop.eup %142 }
 0x106   :  { %v83_v56 = vsel %vm82_vm7, %v141_v46, %v79_v53  ;;  %v90_v57 = vmul.f32 %v143_v54, %v74_v48  ;;  %vm95_vm9 = vweird.f32 %v143_v54 }
 0x107   :  { %v88_v58 = vsel %vm85_vm8, %v87_v55, %v83_v56  ;;  %vm96_vm11 = vmor %vm94_vm10, %vm95_vm9 }
 0x108   :  { %v103_v59 = vmul.f32 %v204_v9, %v88_v58  ;;  %v91_v60 = vsub.f32 1.0, %v90_v57 }
 0x10a   :  { %105 = vst.msk [vmem:[%s234_s3] sm:$0xff] %vm55_vm0, %v103_v59  ;;  %v92_v62 = vmul.f32 %v143_v54, %v91_v60 }
 0x10c   :  { %v93_v0 = vadd.f32 %v143_v54, %v92_v62 }
 0x10e   :  { %v97_v2 = vsel %vm96_vm11, %v143_v54, %v93_v0 }
 0x10f   :  { %v102_v3 = vsel %vm99_vm12, %v101_v1, %v97_v2 }
 0x110   :  { %v104_v4 = vmul.f32 %v208_v12, %v102_v3 }
 0x112   :  { %106 = vst.msk [vmem:[%s234_s3 + $0x8] sm:$0xf] %vm59_vm1, %v104_v4 }
 0x113   :  { %168 = dma.done.wait [#allocation3], 32  }
 0x114   :  { %169 = vsyncadd [#allocation3], 4294967264 }
 0x115   :  { %126 = vsyncpa [#allocation3], 1 }

</bundles_post_ra>
